<compile_context>
chip_gen: v7x
topology: tpu7x:2x2x1
jax: 0.10.0
libtpu: 0.0.40
codegen_flags: <defaults>
</compile_context>

<pallas_src>
import math

import jax
import jax.numpy as jnp
from jax.experimental import pallas as pl
from jax.experimental.pallas import tpu as pltpu


# ----------------------------------------------------------------------------
# Parameter ("buffer") setup — mirrors PositionalEncoding.__init__
# ----------------------------------------------------------------------------
def make_positional_encoding(d_model: int, max_len: int = 5000) -> jnp.ndarray:
    position = jnp.arange(0, max_len, dtype=jnp.float32)[:, None]          # (max_len, 1)
    div_term = jnp.exp(
        jnp.arange(0, d_model, 2, dtype=jnp.float32) * -(math.log(10000.0) / d_model)
    )                                                                       # (d_model//2,)
    pe = jnp.zeros((max_len, d_model), dtype=jnp.float32)
    pe = pe.at[:, 0::2].set(jnp.sin(position * div_term))
    pe = pe.at[:, 1::2].set(jnp.cos(position * div_term))
    return pe[None]                                                         # (1, max_len, d_model)


def make_pe_slab(pe: jnp.ndarray, n_nodes: int, dtype=jnp.float32) -> jnp.ndarray:
    """Init-time: pre-broadcast pe (1, max_len, D) over the node axis into a
    lane-dense (max_len, N*D) slab so the forward does zero layout work."""
    _, max_len, d_model = pe.shape
    slab = jnp.broadcast_to(pe[0, :, None, :], (max_len, n_nodes, d_model))
    return slab.reshape(max_len, n_nodes * d_model).astype(dtype)


# ----------------------------------------------------------------------------
# Pallas kernel: lane-dense elementwise add
# ----------------------------------------------------------------------------
def _add_pe_kernel(x_ref, pe_ref, o_ref):
    # x_ref : (bB, tT, ND)  VMEM block (batch tile x T tile, lane-dense N*D)
    # pe_ref: (tT, ND)      VMEM block (same T tile; resident across the batch axis)
    o_ref[...] = x_ref[...] + pe_ref[...][None]


def _choose_block(B: int, T: int, ND: int, itemsize: int,
                  target_bytes: int = 2 << 20) -> tuple[int, int]:
    """Jointly pick (bB, tT) so each x block is ~target_bytes.

    tT is a multiple of the dtype-aware sublane tile (8 f32 / 16 bf16 / 32 i8)
    or the full T extent; when T is short the remaining budget is folded into
    the batch dimension so grid steps stay large.
    """
    sub_mult = max(8, 32 // max(itemsize, 1))         # 8 f32, 16 bf16, 32 int8
    row_bytes = max(ND * itemsize, 1)
    rows = max(1, target_bytes // row_bytes)          # total rows (over bB*tT) per step
    if rows >= T:
        tT = T                                        # full T axis -> fold batch
        bB = max(1, min(B, rows // T))
    else:
        tT = (rows // sub_mult) * sub_mult
        tT = min(max(tT, sub_mult), T)                # full-extent fallback if T < sub_mult
        bB = 1
    return bB, tT


def positional_encoding_forward(x: jnp.ndarray, pe_slab: jnp.ndarray,
                                *, target_bytes: int = 2 << 20,
                                donate_x: bool = False) -> jnp.ndarray:
    """x: (B, T, N, D); pe_slab: (max_len, N*D) from make_pe_slab.

    Returns x + pe[:, :T, None, :] (broadcast over batch and node axes).
    Set donate_x=True only when the caller donates x's buffer (e.g. jit
    donate_argnums); then the output aliases x's HBM allocation for free.
    """
    B, T, N, D = x.shape
    ND = N * D
    if pe_slab.shape[1] != ND:
        raise ValueError(f"pe_slab feature dim {pe_slab.shape[1]} != N*D = {ND}")
    if T > pe_slab.shape[0]:
        raise ValueError(f"sequence length T={T} exceeds pe max_len={pe_slab.shape[0]}")

    x2 = x.reshape(B, T, ND)                         # free row-major view
    pe_b = pe_slab.astype(x.dtype)                   # no-op when slab already matches

    bB, tT = _choose_block(B, T, ND, x.dtype.itemsize, target_bytes)
    n_t = pl.cdiv(T, tT)
    n_b = pl.cdiv(B, bB)

    out2 = pl.pallas_call(
        _add_pe_kernel,
        out_shape=jax.ShapeDtypeStruct((B, T, ND), x.dtype),
        # T-tiles lead so the pe block index is constant over the inner batch
        # axis (Pallas skips the re-DMA) and so megacore sharding on v7x still
        # preserves that reuse per core.
        grid=(n_t, n_b),
        in_specs=[
            pl.BlockSpec((bB, tT, ND), lambda t, b: (b, t, 0)),
            pl.BlockSpec((tT, ND), lambda t, b: (t, 0)),
        ],
        out_specs=pl.BlockSpec((bB, tT, ND), lambda t, b: (b, t, 0)),
        input_output_aliases=({0: 0} if donate_x else {}),
        compiler_params=pltpu.CompilerParams(
            dimension_semantics=("parallel", "parallel"),
        ),
    )(x2, pe_b)

    return out2.reshape(B, T, N, D)
    # TODO(synk): for a real model, fuse this add as an epilogue of the adjacent
    # projection/embedding kernel — a standalone elementwise add is HBM-roofline
    # bound (read x + write out) and fusion is the only way past that.


# ----------------------------------------------------------------------------
# Demo / self-check
# ----------------------------------------------------------------------------
if __name__ == "__main__":
    B, T, N, D = 2, 8, 4, 32        # batch, seq, nodes, d_model
    MAX_LEN = 64

    key = jax.random.PRNGKey(0)
    x = jax.random.normal(key, (B, T, N, D), dtype=jnp.float32)

    pe = make_positional_encoding(D, max_len=MAX_LEN)          # (1, MAX_LEN, D)
    pe_slab = make_pe_slab(pe, n_nodes=N, dtype=x.dtype)       # (MAX_LEN, N*D), init-time

    out = positional_encoding_forward(x, pe_slab)
    out = jax.block_until_ready(out)

    # pure-JAX reference for sanity
    ref = x + pe[:, :T, None, :]
    assert out.shape == x.shape
    assert jnp.allclose(out, ref, atol=1e-6, rtol=1e-6)

    print("KERNEL_OK")
</pallas_src>

<mosaic_0001>
module attributes {stable_mosaic.version = 11 : i64} {
  func.func @_add_pe_kernel(%arg0: i32, %arg1: i32, %arg2: memref<2x8x128xf32, #tpu.memory_space<vmem>>, %arg3: memref<8x128xf32, #tpu.memory_space<vmem>>, %arg4: memref<2x8x128xf32, #tpu.memory_space<vmem>>) attributes {dimension_semantics = [#tpu.dimension_semantics<parallel>, #tpu.dimension_semantics<parallel>], iteration_bounds = array<i64: 1, 1>, scalar_prefetch = 0 : i64, scratch_operands = 0 : i64, tpu.core_type = #tpu.core_type<tc>, window_params = [{transform_indices = @transform_0, window_bounds = array<i64: 2, 8, 128>}, {transform_indices = @transform_1, window_bounds = array<i64: 8, 128>}, {transform_indices = @transform_2, window_bounds = array<i64: 2, 8, 128>}]} {
    %c0 = arith.constant 0 : index
    %c0_0 = arith.constant 0 : index
    %c0_1 = arith.constant 0 : index
    %0 = vector.load %arg2[%c0, %c0_0, %c0_1] : memref<2x8x128xf32, #tpu.memory_space<vmem>>, vector<2x8x128xf32>
    %c0_2 = arith.constant 0 : index
    %c0_3 = arith.constant 0 : index
    %1 = vector.load %arg3[%c0_2, %c0_3] : memref<8x128xf32, #tpu.memory_space<vmem>>, vector<8x128xf32>
    %2 = vector.shape_cast %1 : vector<8x128xf32> to vector<1x8x128xf32>
    %3 = vector.broadcast %2 : vector<1x8x128xf32> to vector<2x8x128xf32>
    %4 = arith.addf %0, %3 : vector<2x8x128xf32>
    %c0_4 = arith.constant 0 : index
    %c0_5 = arith.constant 0 : index
    %c0_6 = arith.constant 0 : index
    %5 = vector.load %arg4[%c0_4, %c0_5, %c0_6] : memref<2x8x128xf32, #tpu.memory_space<vmem>>, vector<2x8x128xf32>
    tpu.vector_store %arg4[%c0_4, %c0_5, %c0_6], %4 {strides = array<i32>} : memref<2x8x128xf32, #tpu.memory_space<vmem>>, vector<2x8x128xf32>,
    return
  }
  func.func @transform_0(%arg0: i32, %arg1: i32) -> (i32, i32, i32) {
    %c0_i32 = arith.constant 0 : i32
    %c0_i32_0 = arith.constant 0 : i32
    return %arg1, %arg0, %c0_i32 : i32, i32, i32
  }
  func.func @transform_1(%arg0: i32, %arg1: i32) -> (i32, i32) {
    %c0_i32 = arith.constant 0 : i32
    %c0_i32_0 = arith.constant 0 : i32
    return %arg0, %c0_i32 : i32, i32
  }
  func.func @transform_2(%arg0: i32, %arg1: i32) -> (i32, i32, i32) {
    %c0_i32 = arith.constant 0 : i32
    %c0_i32_0 = arith.constant 0 : i32
    return %arg1, %arg0, %c0_i32 : i32, i32, i32
  }
}

</mosaic_0001>

<bundles_post_ra>
// kernel: tpu_custom_call.1
= control target key start
LH: loop header
LB: loop body
LE: loop exit
PB: predicated region body
PF: predicated region fallthrough
CT: control target
= control target key end

     0   :  { %7 = vsyncpa [#allocation3], 0  ;;  %s205_s0 = inlined_call_operand.hbm [shape: f32[2,8,128], index: 0, kind: input, shape index: {}]   ;;  %s206_s1 = inlined_call_operand.hbm [shape: f32[64,128], index: 1, kind: input, shape index: {}]   ;;  %s207_s2 = inlined_call_operand.hbm [shape: f32[2,8,128], index: 2, kind: output, shape index: {}]  }
   0x1   :  { %8 = vsyncpa [#allocation6], 0 }
   0x2   :  { %9 = vsyncpa [#allocation4], 0  ;;  %s140_s9 = smov [#allocation2]   ;;  %s68_s13 = scalar_lea.hbm %s205_s0, 256 }
   0x3   :  { %s15_s10 = sshll.u32 %s140_s9, 4  ;;  %p69_p0 = scmp.ne.s32.totalorder %s205_s0, %s68_s13  ;;  %s16_s10 = int_to_ptr.vmem [resolvable:$true] %s15_s10 }
   0x4   :  { %p72_p1 = scmp.lt.u32.totalorder %s68_s13, %s205_s0 }
   0x6   :  { %p74_p2 = pnand %p72_p1, %p69_p0 }
   0x8   :  { %77 = shalt.err (!%p74_p2)
}
   0x9   :  { %s78_s18 = scalar_lea.vmem %s16_s10, 256  ;;  %p83_p4 = scmp.lt.s32.totalorder %s16_s10, %s16_s10 }
   0xa   :  { %p79_p3 = scmp.ne.s32.totalorder %s16_s10, %s78_s18  ;;  %p84_p5 = scmp.lt.s32.totalorder %s78_s18, %s78_s18 }
   0xc   :  { %p85_p6 = por %p84_p5, %p83_p4 }
   0xe   :  { %p86_p7 = pnand %p85_p6, %p79_p3 }
  0x10   :  { %89 = shalt.err (!%p86_p7)
}
  0x11   :  { %s141_s19 = smov 128   ;;  %s142_s20 = smov 8  }
  0x12   :  { %21 = dma.hbm_to_vmem [thread:$0]  %s205_s0, 256, %s16_s10, [#allocation3], %s141_s19, %s141_s19, %s142_s20  }
  0x13   :  { %s143_s23 = smov [#allocation5]   ;;  %s90_s27 = scalar_lea.hbm %s206_s1, 128 }
  0x14   :  { %s28_s24 = sshll.u32 %s143_s23, 4  ;;  %p91_p8 = scmp.ne.s32.totalorder %s206_s1, %s90_s27  ;;  %s29_s24 = int_to_ptr.vmem [resolvable:$true] %s28_s24 }
  0x15   :  { %s92_s4 = scalar_lea.hbm %s206_s1, 1024  ;;  %p94_p10 = scmp.lt.u32.totalorder %s90_s27, %s206_s1 }
  0x16   :  { %p93_p9 = scmp.lt.u32.totalorder %s92_s4, %s90_s27 }
  0x18   :  { %p95_p11 = por %p94_p10, %p93_p9 }
  0x1a   :  { %p96_p12 = pnand %p95_p11, %p91_p8 }
  0x1c   :  { %99 = shalt.err (!%p96_p12)
}
  0x1d   :  { %s100_s0 = scalar_lea.vmem %s29_s24, 128  ;;  %p105_p0 = scmp.lt.s32.totalorder %s29_s24, %s29_s24 }
  0x1e   :  { %p101_p13 = scmp.ne.s32.totalorder %s29_s24, %s100_s0  ;;  %p106_p1 = scmp.lt.s32.totalorder %s100_s0, %s100_s0 }
  0x20   :  { %p107_p2 = por %p106_p1, %p105_p0 }
  0x22   :  { %p108_p3 = pnand %p107_p2, %p101_p13 }
  0x24   :  { %111 = shalt.err (!%p108_p3)
}
  0x25   :  { %31 = dma.hbm_to_vmem [thread:$0]  %s206_s1, 128, %s29_s24, [#allocation6]  }
  0x26   :  { %134 = dma.done.wait [#allocation3], 256  }
  0x27   :  { %135 = vsyncadd [#allocation3], 4294967040 }
  0x28   :  { %136 = dma.done.wait [#allocation6], 128  }
  0x29   :  { %137 = vsyncadd [#allocation6], 4294967168  ;;  %s144_s9 = smov [#allocation7]   ;;  %v38_v0 = vld [vmem:[#allocation2] sm:$0xff]  ;;  %v40_v1 = vld [vmem:[#allocation5] sm:$0xff] }
  0x2a   :  { %s50_s10 = sshll.u32 %s144_s9, 4  ;;  %v39_v2 = vld [vmem:[#allocation2 + $0x8] sm:$0xff]  ;;  %v41_v3 = vadd.f32 %v40_v1, %v38_v0  ;;  %s51_s10 = int_to_ptr.vmem [resolvable:$true] %s50_s10 }
  0x2b   :  { %v42_v4 = vadd.f32 %v40_v1, %v39_v2  ;;  %s112_s11 = scalar_lea.vmem %s51_s10, 256  ;;  %p117_p5 = scmp.lt.s32.totalorder %s51_s10, %s51_s10 }
  0x2c   :  { %43 = vst [vmem:[#allocation7] sm:$0xff] %v41_v3  ;;  %p113_p4 = scmp.ne.s32.totalorder %s51_s10, %s112_s11  ;;  %p118_p6 = scmp.lt.s32.totalorder %s112_s11, %s112_s11 }
  0x2d   :  { %44 = vst [vmem:[#allocation7 + $0x8] sm:$0xff] %v42_v4 }
  0x2e   :  { %p119_p7 = por %p118_p6, %p117_p5 }
  0x30   :  { %p120_p8 = pnand %p119_p7, %p113_p4 }
  0x32   :  { %123 = shalt.err (!%p120_p8)
}
  0x33   :  { %s124_s13 = scalar_lea.hbm %s207_s2, 256 }
  0x34   :  { %p125_p9 = scmp.ne.s32.totalorder %s207_s2, %s124_s13  ;;  %p128_p10 = scmp.lt.u32.totalorder %s124_s13, %s207_s2 }
  0x36   :  { %p130_p11 = pnand %p128_p10, %p125_p9 }
  0x38   :  { %133 = shalt.err (!%p130_p11)
}
  0x39   :  { %56 = dma.vmem_to_hbm [thread:$0]  %s51_s10, 256, %s207_s2, [#allocation4], %s141_s19, %s141_s19, %s142_s20  }
  0x3a   :  { %138 = dma.done.wait [#allocation4], 256  }
  0x3b   :  { %139 = vsyncadd [#allocation4], 4294967040 }
  0x3c   :  { %60 = vsyncpa [#allocation3], 1 }
  0x3d   :  { %61 = vsyncpa [#allocation6], 1 }
  0x3e   :  { %62 = vsyncpa [#allocation4], 1 }

</bundles_post_ra>
